<compile_context>
chip_gen: v6e
topology: v6e:2x2x1
jax: 0.10.0
libtpu: 0.0.40
codegen_flags: <defaults>
</compile_context>

<pallas_src>
import functools

import jax
import jax.numpy as jnp
from jax.experimental import pallas as pl
from jax.experimental.pallas import tpu as pltpu

_SMOOTH_NR = 1e-5   # MONAI DiceLoss defaults
_SMOOTH_DR = 1e-5
_GAMMA = 2.0        # MONAI FocalLoss default (baked into the squared shortcut)


def _dice_focal_kernel(x_ref, t_ref, inter_ref, denom_ref, focal_ref, *,
                       hw, thw, ch, n_j, need_mask):
    j = pl.program_id(2)                       # spatial-reduction axis (innermost)

    @pl.when(j == 0)
    def _init():
        inter_ref[...] = jnp.zeros_like(inter_ref)
        denom_ref[...] = jnp.zeros_like(denom_ref)
        focal_ref[...] = jnp.zeros_like(focal_ref)

    # Global spatial block index / element offset (partition-aware).
    base = (pl.program_id(1) * n_j + j) * thw
    n_chunks = thw // ch                       # static

    def process(c, masked):
        off = c * ch
        if not isinstance(off, int):
            off = pl.multiple_of(off, ch)
        x = x_ref[:, pl.ds(off, ch)].astype(jnp.float32)   # (tm, ch) logits
        t = t_ref[:, pl.ds(off, ch)].astype(jnp.float32)   # (tm, ch) binary targets

        if masked:
            col = jax.lax.broadcasted_iota(jnp.int32, x.shape, 1) + (base + off)
            valid = col < hw
            x = jnp.where(valid, x, 0.0)
            t = jnp.where(valid, t, 0.0)

        # One exp, one log, one divide per element (EUP); everything else VPU.
        e = jnp.exp(-jnp.abs(x))
        inv_1pe = 1.0 / (1.0 + e)
        p = jnp.where(x >= 0.0, 1.0, e) * inv_1pe           # sigmoid(x)
        log_sig = jnp.minimum(x, 0.0) - jnp.log(1.0 + e)    # log(sigmoid(x))

        # BCE-with-logits:  max(x,0) - x*t + log(1+exp(-|x|)) == x - x*t - log_sig
        bce = x - x * t - log_sig
        # Focal modulation (1 - p_t)^gamma with gamma=2, binary targets.
        omp = jnp.where(t >= 0.5, 1.0 - p, p)
        focal = omp * omp * bce

        if masked:
            p = jnp.where(valid, p, 0.0)
            focal = jnp.where(valid, focal, 0.0)
            # t already zeroed on masked lanes.

        inter_ref[...] += jnp.sum(t * p, axis=1, keepdims=True)
        denom_ref[...] += jnp.sum(t + p, axis=1, keepdims=True)
        focal_ref[...] += jnp.sum(focal, axis=1, keepdims=True)

    def run(masked):
        if n_chunks == 1:
            process(0, masked)
        else:
            @pl.loop(0, n_chunks)
            def _(c):
                process(c, masked)

    if need_mask:
        is_edge = base + thw > hw              # last (or phantom) spatial block

        @pl.when(is_edge)
        def _():
            run(True)

        @pl.when(base + thw <= hw)
        def _():
            run(False)
    else:
        run(False)


def _plan(bc, hw, t_itemsize):
    """Choose (tm, thw, ch, P, n_j, nblk, need_mask)."""
    LANE = 128
    BLOCK_ELEMS = 2 * 1024 * 1024   # ~8 MiB f32 per input DMA block
    CHUNK_ELEMS = 32 * 1024         # in-kernel elementwise working set
    ROW_CAP = 1024                  # bounds (tm,1) accumulator VMEM tiles

    sub = max(8, 32 // max(int(t_itemsize), 1))   # sublane multiple per dtype

    # Rows per block: prefer whole BC, else a divisor of BC (no wasted tail).
    if bc <= ROW_CAP:
        tm = bc
    else:
        tm = None
        d = (ROW_CAP // sub) * sub
        while d >= sub:
            if bc % d == 0:
                tm = d
                break
            d -= sub
        if tm is None:
            tm = (ROW_CAP // sub) * sub
    n_row_blocks = pl.cdiv(bc, tm)

    # Chunk lanes (compute granularity) and block lanes (DMA granularity).
    ch = max(LANE, min(((CHUNK_ELEMS // tm) // LANE) * LANE, 4096))
    if hw <= ch:
        ch = hw
        thw = hw
    else:
        lanes_budget = max(ch, ((BLOCK_ELEMS // tm) // ch) * ch)
        thw = min(lanes_budget, (hw // ch) * ch)
        # Give v7x's 2nd TensorCore a parallel axis when rows don't provide one.
        if n_row_blocks == 1 and pl.cdiv(hw, thw) < 2 and pl.cdiv(hw, ch) >= 2:
            thw = pl.cdiv(pl.cdiv(hw, ch), 2) * ch

    nblk = pl.cdiv(hw, thw)
    P = 2 if (n_row_blocks == 1 and nblk >= 2) else 1
    n_j = pl.cdiv(nblk, P)
    need_mask = (hw % thw != 0) or (P * n_j != nblk)
    return tm, thw, ch, P, n_j, nblk, need_mask


@jax.jit
def multi_label_segmentation_loss(output, target):
    B, C, H, W = output.shape
    BC, HW = B * C, H * W

    # Lane-dense 2-D view: rows = (b, c) pairs, lanes = flattened spatial dim.
    x2 = output.reshape(BC, HW)
    t2 = target.reshape(BC, HW)     # any dtype (f32 / bf16 / int8) — cast in-kernel

    tm, thw, ch, P, n_j, nblk, need_mask = _plan(
        BC, HW, jnp.dtype(target.dtype).itemsize)

    kernel = functools.partial(
        _dice_focal_kernel, hw=HW, thw=thw, ch=ch, n_j=n_j, need_mask=need_mask)

    def in_map(i, p, j):
        g = p * n_j + j
        if P * n_j != nblk:                       # clamp phantom blocks (masked out)
            g = jnp.minimum(g, nblk - 1)
        return (i, g)

    stat_shape = jax.ShapeDtypeStruct((P, BC, 1), jnp.float32)
    stat_spec = pl.BlockSpec((None, tm, 1), lambda i, p, j: (p, i, 0))

    inter, denom, fsum = pl.pallas_call(
        kernel,
        out_shape=(stat_shape, stat_shape, stat_shape),
        grid_spec=pltpu.PrefetchScalarGridSpec(
            num_scalar_prefetch=0,
            grid=(pl.cdiv(BC, tm), P, n_j),
            in_specs=[
                pl.BlockSpec((tm, thw), in_map),
                pl.BlockSpec((tm, thw), in_map),
            ],
            out_specs=(stat_spec, stat_spec, stat_spec),
        ),
        compiler_params=pltpu.CompilerParams(
            dimension_semantics=("parallel", "parallel", "arbitrary"),
            vmem_limit_bytes=48 * 1024 * 1024,   # fits v7x 64 MiB; fine on v5e/v6e
        ),
    )(x2, t2)

    # Finalise (tiny) in the wrapper: reduce partitions, dice per (b,c), means.
    inter = jnp.sum(inter, axis=0)[:, 0]
    denom = jnp.sum(denom, axis=0)[:, 0]
    fsum = jnp.sum(fsum, axis=0)[:, 0]
    dice = 1.0 - (2.0 * inter + _SMOOTH_NR) / (denom + _SMOOTH_DR)
    return jnp.mean(dice) + jnp.sum(fsum) / (BC * HW)


# ------------------------- pure-JAX reference ------------------------------

def _log_sigmoid(x):
    return jnp.minimum(x, 0.0) - jnp.log(1.0 + jnp.exp(-jnp.abs(x)))


def _reference(output, target):
    # Mirrors MONAI DiceFocalLoss(sigmoid=True, reduction='none') per channel,
    # stacked and averaged (logsigmoid-based focal formulation).
    x = output.astype(jnp.float32)
    t = target.astype(jnp.float32)
    p = jax.nn.sigmoid(x)
    inter = jnp.sum(t * p, axis=(2, 3))
    ground = jnp.sum(t, axis=(2, 3))
    pred = jnp.sum(p, axis=(2, 3))
    dice = 1.0 - (2.0 * inter + _SMOOTH_NR) / (ground + pred + _SMOOTH_DR)
    bce = x * (1.0 - t) - _log_sigmoid(x)
    invprobs = _log_sigmoid(-x * (t * 2.0 - 1.0))
    focal = jnp.exp(invprobs * _GAMMA) * bce
    return jnp.mean(dice) + jnp.mean(focal)


if __name__ == "__main__":
    key = jax.random.PRNGKey(0)
    k1, k2 = jax.random.split(key)
    B, C, H, W = 2, 4, 16, 16
    logits = jax.random.normal(k1, (B, C, H, W), dtype=jnp.float32)
    # Binary targets shipped as bf16 (exact for 0/1) to cut target HBM bytes.
    target = (jax.random.uniform(k2, (B, C, H, W)) > 0.5).astype(jnp.bfloat16)

    loss = jax.block_until_ready(multi_label_segmentation_loss(logits, target))
    ref = _reference(logits, target.astype(jnp.float32))
    assert jnp.allclose(loss, ref, rtol=1e-5, atol=1e-5), (loss, ref)
    print("KERNEL_OK")
</pallas_src>

<mosaic_0001>
module attributes {stable_mosaic.version = 11 : i64} {
  func.func @_dice_focal_kernel(%arg0: i32, %arg1: i32, %arg2: i32, %arg3: memref<8x256xf32, #tpu.memory_space<vmem>>, %arg4: memref<8x256xbf16, #tpu.memory_space<vmem>>, %arg5: memref<1x8x1xf32, #tpu.memory_space<vmem>>, %arg6: memref<1x8x1xf32, #tpu.memory_space<vmem>>, %arg7: memref<1x8x1xf32, #tpu.memory_space<vmem>>) attributes {dimension_semantics = [#tpu.dimension_semantics<parallel>, #tpu.dimension_semantics<parallel>, #tpu.dimension_semantics<arbitrary>], iteration_bounds = array<i64: 1, 1, 1>, scalar_prefetch = 0 : i64, scratch_operands = 0 : i64, tpu.core_type = #tpu.core_type<tc>, window_params = [{transform_indices = @transform_0, window_bounds = array<i64: 8, 256>}, {transform_indices = @transform_1, window_bounds = array<i64: 8, 256>}, {transform_indices = @transform_2, window_bounds = array<i64: 1, 8, 1>}, {transform_indices = @transform_3, window_bounds = array<i64: 1, 8, 1>}, {transform_indices = @transform_4, window_bounds = array<i64: 1, 8, 1>}]} {
    %c0_i32 = arith.constant 0 : i32
    %0 = arith.cmpi eq, %arg2, %c0_i32 : i32
    %1 = arith.extui %0 : i1 to i32
    %c0_i32_0 = arith.constant 0 : i32
    %2 = arith.cmpi ne, %1, %c0_i32_0 : i32
    scf.if %2 {
      %cst_33 = arith.constant 0.000000e+00 : f32
      %61 = vector.broadcast %cst_33 : f32 to vector<8x1xf32>
      %c0_34 = arith.constant 0 : index
      %c0_35 = arith.constant 0 : index
      %c0_36 = arith.constant 0 : index
      %62 = vector.load %arg5[%c0_34, %c0_35, %c0_36] : memref<1x8x1xf32, #tpu.memory_space<vmem>>, vector<1x8x1xf32>
      %63 = vector.shape_cast %62 : vector<1x8x1xf32> to vector<8x1xf32>
      %64 = vector.shape_cast %61 : vector<8x1xf32> to vector<1x8x1xf32>
      tpu.vector_store %arg5[%c0_34, %c0_35, %c0_36], %64 {strides = array<i32>} : memref<1x8x1xf32, #tpu.memory_space<vmem>>, vector<1x8x1xf32>,
      %cst_37 = arith.constant 0.000000e+00 : f32
      %65 = vector.broadcast %cst_37 : f32 to vector<8x1xf32>
      %c0_38 = arith.constant 0 : index
      %c0_39 = arith.constant 0 : index
      %c0_40 = arith.constant 0 : index
      %66 = vector.load %arg6[%c0_38, %c0_39, %c0_40] : memref<1x8x1xf32, #tpu.memory_space<vmem>>, vector<1x8x1xf32>
      %67 = vector.shape_cast %66 : vector<1x8x1xf32> to vector<8x1xf32>
      %68 = vector.shape_cast %65 : vector<8x1xf32> to vector<1x8x1xf32>
      tpu.vector_store %arg6[%c0_38, %c0_39, %c0_40], %68 {strides = array<i32>} : memref<1x8x1xf32, #tpu.memory_space<vmem>>, vector<1x8x1xf32>,
      %cst_41 = arith.constant 0.000000e+00 : f32
      %69 = vector.broadcast %cst_41 : f32 to vector<8x1xf32>
      %c0_42 = arith.constant 0 : index
      %c0_43 = arith.constant 0 : index
      %c0_44 = arith.constant 0 : index
      %70 = vector.load %arg7[%c0_42, %c0_43, %c0_44] : memref<1x8x1xf32, #tpu.memory_space<vmem>>, vector<1x8x1xf32>
      %71 = vector.shape_cast %70 : vector<1x8x1xf32> to vector<8x1xf32>
      %72 = vector.shape_cast %69 : vector<8x1xf32> to vector<1x8x1xf32>
      tpu.vector_store %arg7[%c0_42, %c0_43, %c0_44], %72 {strides = array<i32>} : memref<1x8x1xf32, #tpu.memory_space<vmem>>, vector<1x8x1xf32>,
    } else {
    }
    %c0 = arith.constant 0 : index
    %c0_1 = arith.constant 0 : index
    %3 = vector.load %arg3[%c0, %c0_1] : memref<8x256xf32, #tpu.memory_space<vmem>>, vector<8x256xf32>
    %c0_2 = arith.constant 0 : index
    %c0_3 = arith.constant 0 : index
    %4 = vector.load %arg4[%c0_2, %c0_3] : memref<8x256xbf16, #tpu.memory_space<vmem>>, vector<8x256xbf16>
    %5 = arith.extf %4 : vector<8x256xbf16> to vector<8x256xf32>
    %6 = math.absf %3 : vector<8x256xf32>
    %cst = arith.constant 0.000000e+00 : f32
    %7 = vector.broadcast %cst : f32 to vector<8x256xf32>
    %8 = arith.subf %7, %6 : vector<8x256xf32>
    %9 = math.exp %8 : vector<8x256xf32>
    %cst_4 = arith.constant 1.000000e+00 : f32
    %10 = vector.broadcast %cst_4 : f32 to vector<8x256xf32>
    %11 = arith.addf %10, %9 : vector<8x256xf32>
    %cst_5 = arith.constant 1.000000e+00 : f32
    %12 = vector.broadcast %cst_5 : f32 to vector<8x256xf32>
    %13 = arith.divf %12, %11 : vector<8x256xf32>
    %cst_6 = arith.constant 0.000000e+00 : f32
    %14 = vector.broadcast %cst_6 : f32 to vector<8x256xf32>
    %15 = arith.cmpf oge, %3, %14 : vector<8x256xf32>
    %cst_7 = arith.constant 1.000000e+00 : f32
    %16 = vector.broadcast %cst_7 : f32 to vector<8x256xf32>
    %17 = arith.select %15, %16, %9 : vector<8x256xi1>, vector<8x256xf32>
    %18 = arith.mulf %17, %13 : vector<8x256xf32>
    %cst_8 = arith.constant 0.000000e+00 : f32
    %19 = vector.broadcast %cst_8 : f32 to vector<8x256xf32>
    %20 = arith.minimumf %3, %19 : vector<8x256xf32>
    %cst_9 = arith.constant 1.000000e+00 : f32
    %21 = vector.broadcast %cst_9 : f32 to vector<8x256xf32>
    %22 = arith.addf %21, %9 : vector<8x256xf32>
    %23 = math.log %22 : vector<8x256xf32>
    %24 = arith.subf %20, %23 : vector<8x256xf32>
    %25 = arith.mulf %3, %5 : vector<8x256xf32>
    %26 = arith.subf %3, %25 : vector<8x256xf32>
    %27 = arith.subf %26, %24 : vector<8x256xf32>
    %cst_10 = arith.constant 5.000000e-01 : f32
    %28 = vector.broadcast %cst_10 : f32 to vector<8x256xf32>
    %29 = arith.cmpf oge, %5, %28 : vector<8x256xf32>
    %cst_11 = arith.constant 1.000000e+00 : f32
    %30 = vector.broadcast %cst_11 : f32 to vector<8x256xf32>
    %31 = arith.subf %30, %18 : vector<8x256xf32>
    %32 = arith.select %29, %31, %18 : vector<8x256xi1>, vector<8x256xf32>
    %33 = arith.mulf %32, %32 : vector<8x256xf32>
    %34 = arith.mulf %33, %27 : vector<8x256xf32>
    %c0_12 = arith.constant 0 : index
    %c0_13 = arith.constant 0 : index
    %c0_14 = arith.constant 0 : index
    %35 = vector.load %arg5[%c0_12, %c0_13, %c0_14] : memref<1x8x1xf32, #tpu.memory_space<vmem>>, vector<1x8x1xf32>
    %36 = vector.shape_cast %35 : vector<1x8x1xf32> to vector<8x1xf32>
    %37 = arith.mulf %5, %18 : vector<8x256xf32>
    %cst_15 = arith.constant dense<0.000000e+00> : vector<8xf32>
    %38 = vector.multi_reduction <add>, %37, %cst_15 [1] : vector<8x256xf32> to vector<8xf32>
    %39 = vector.shape_cast %38 : vector<8xf32> to vector<8x1xf32>
    %40 = arith.addf %36, %39 : vector<8x1xf32>
    %c0_16 = arith.constant 0 : index
    %c0_17 = arith.constant 0 : index
    %c0_18 = arith.constant 0 : index
    %41 = vector.load %arg5[%c0_16, %c0_17, %c0_18] : memref<1x8x1xf32, #tpu.memory_space<vmem>>, vector<1x8x1xf32>
    %42 = vector.shape_cast %41 : vector<1x8x1xf32> to vector<8x1xf32>
    %43 = vector.shape_cast %40 : vector<8x1xf32> to vector<1x8x1xf32>
    tpu.vector_store %arg5[%c0_16, %c0_17, %c0_18], %43 {strides = array<i32>} : memref<1x8x1xf32, #tpu.memory_space<vmem>>, vector<1x8x1xf32>,
    %c0_19 = arith.constant 0 : index
    %c0_20 = arith.constant 0 : index
    %c0_21 = arith.constant 0 : index
    %44 = vector.load %arg6[%c0_19, %c0_20, %c0_21] : memref<1x8x1xf32, #tpu.memory_space<vmem>>, vector<1x8x1xf32>
    %45 = vector.shape_cast %44 : vector<1x8x1xf32> to vector<8x1xf32>
    %46 = arith.addf %5, %18 : vector<8x256xf32>
    %cst_22 = arith.constant dense<0.000000e+00> : vector<8xf32>
    %47 = vector.multi_reduction <add>, %46, %cst_22 [1] : vector<8x256xf32> to vector<8xf32>
    %48 = vector.shape_cast %47 : vector<8xf32> to vector<8x1xf32>
    %49 = arith.addf %45, %48 : vector<8x1xf32>
    %c0_23 = arith.constant 0 : index
    %c0_24 = arith.constant 0 : index
    %c0_25 = arith.constant 0 : index
    %50 = vector.load %arg6[%c0_23, %c0_24, %c0_25] : memref<1x8x1xf32, #tpu.memory_space<vmem>>, vector<1x8x1xf32>
    %51 = vector.shape_cast %50 : vector<1x8x1xf32> to vector<8x1xf32>
    %52 = vector.shape_cast %49 : vector<8x1xf32> to vector<1x8x1xf32>
    tpu.vector_store %arg6[%c0_23, %c0_24, %c0_25], %52 {strides = array<i32>} : memref<1x8x1xf32, #tpu.memory_space<vmem>>, vector<1x8x1xf32>,
    %c0_26 = arith.constant 0 : index
    %c0_27 = arith.constant 0 : index
    %c0_28 = arith.constant 0 : index
    %53 = vector.load %arg7[%c0_26, %c0_27, %c0_28] : memref<1x8x1xf32, #tpu.memory_space<vmem>>, vector<1x8x1xf32>
    %54 = vector.shape_cast %53 : vector<1x8x1xf32> to vector<8x1xf32>
    %cst_29 = arith.constant dense<0.000000e+00> : vector<8xf32>
    %55 = vector.multi_reduction <add>, %34, %cst_29 [1] : vector<8x256xf32> to vector<8xf32>
    %56 = vector.shape_cast %55 : vector<8xf32> to vector<8x1xf32>
    %57 = arith.addf %54, %56 : vector<8x1xf32>
    %c0_30 = arith.constant 0 : index
    %c0_31 = arith.constant 0 : index
    %c0_32 = arith.constant 0 : index
    %58 = vector.load %arg7[%c0_30, %c0_31, %c0_32] : memref<1x8x1xf32, #tpu.memory_space<vmem>>, vector<1x8x1xf32>
    %59 = vector.shape_cast %58 : vector<1x8x1xf32> to vector<8x1xf32>
    %60 = vector.shape_cast %57 : vector<8x1xf32> to vector<1x8x1xf32>
    tpu.vector_store %arg7[%c0_30, %c0_31, %c0_32], %60 {strides = array<i32>} : memref<1x8x1xf32, #tpu.memory_space<vmem>>, vector<1x8x1xf32>,
    return
  }
  func.func @transform_0(%arg0: i32, %arg1: i32, %arg2: i32) -> (i32, i32) {
    %c1_i32 = arith.constant 1 : i32
    %0 = arith.muli %arg1, %c1_i32 : i32
    %1 = arith.addi %0, %arg2 : i32
    %c0_i32 = arith.constant 0 : i32
    return %arg0, %1 : i32, i32
  }
  func.func @transform_1(%arg0: i32, %arg1: i32, %arg2: i32) -> (i32, i32) {
    %c1_i32 = arith.constant 1 : i32
    %0 = arith.muli %arg1, %c1_i32 : i32
    %1 = arith.addi %0, %arg2 : i32
    %c0_i32 = arith.constant 0 : i32
    return %arg0, %1 : i32, i32
  }
  func.func @transform_2(%arg0: i32, %arg1: i32, %arg2: i32) -> (i32, i32, i32) {
    %c0_i32 = arith.constant 0 : i32
    %c0_i32_0 = arith.constant 0 : i32
    return %arg1, %arg0, %c0_i32 : i32, i32, i32
  }
  func.func @transform_3(%arg0: i32, %arg1: i32, %arg2: i32) -> (i32, i32, i32) {
    %c0_i32 = arith.constant 0 : i32
    %c0_i32_0 = arith.constant 0 : i32
    return %arg1, %arg0, %c0_i32 : i32, i32, i32
  }
  func.func @transform_4(%arg0: i32, %arg1: i32, %arg2: i32) -> (i32, i32, i32) {
    %c0_i32 = arith.constant 0 : i32
    %c0_i32_0 = arith.constant 0 : i32
    return %arg1, %arg0, %c0_i32 : i32, i32, i32
  }
}

</mosaic_0001>

<bundles_post_ra>
// kernel: multi_label_segmentation_loss.1
= control target key start
LH: loop header
LB: loop body
LE: loop exit
PB: predicated region body
PF: predicated region fallthrough
CT: control target
= control target key end

     0   :  { %vm62_vm0 = vcmask 7168   ;;  %v175_v2 = vmov 0.0   ;;  %s247_s0 = inlined_call_operand.vmem [shape: f32[8,256], index: 0, kind: input, shape index: {}]   ;;  %s248_s2 = inlined_call_operand.vmem [shape: f32[1,8,1], index: 2, kind: output, shape index: {0}]   ;;  %s249_s1 = inlined_call_operand.vmem [shape: bf16[8,256], index: 1, kind: input, shape index: {}]   ;;  %s250_s3 = inlined_call_operand.vmem [shape: f32[1,8,1], index: 3, kind: output, shape index: {1}]   ;;  %s251_s4 = inlined_call_operand.vmem [shape: f32[1,8,1], index: 4, kind: output, shape index: {2}]  }
   0x1   :  { %v66_v0 = vld [vmem:[%s247_s0] sm:$0xff]  ;;  %v67_v1 = vld [vmem:[%s247_s0 + $0x8] sm:$0xff]  ;;  %63 = vst.msk [vmem:[%s248_s2] sm:$0xff] %vm62_vm0, %v175_v2  ;;  %64 = vst.msk [vmem:[%s250_s3] sm:$0xff] %vm62_vm0, %v175_v2 }
   0x2   :  { %v71_v3 = vand.u32 2147483647, %v66_v0  ;;  %v72_v4 = vand.u32 2147483647, %v67_v1  ;;  %v68_v13 = vld [vmem:[%s249_s1] sm:$0xff]  ;;  %vm85_vm1 = vcmp.ge.f32.partialorder %v66_v0, 0.0 }
   0x3   :  { %v69_v14 = vunpack.c.l.bf16 %v68_v13  ;;  %v70_v15 = vunpack.c.h.bf16 %v68_v13  ;;  %vm86_vm2 = vcmp.ge.f32.partialorder %v67_v1, 0.0  ;;  %v91_v23 = vmin.f32 %v66_v0, 0.0  ;;  %65 = vst.msk [vmem:[%s251_s4] sm:$0xff] %vm62_vm0, %v175_v2 }
   0x4   :  { %v73_v5 = vsub.f32 0.0, %v71_v3  ;;  %v74_v6 = vsub.f32 0.0, %v72_v4  ;;  %v92_v24 = vmin.f32 %v67_v1, 0.0 }
   0x5   :  { %v99_v17 = vmul.f32 %v69_v14, %v66_v0  ;;  %v100_v18 = vmul.f32 %v70_v15, %v67_v1  ;;  %vm105_vm3 = vcmp.ge.f32.partialorder %v69_v14, 0.5  ;;  %vm106_vm4 = vcmp.ge.f32.partialorder %v70_v15, 0.5 }
   0x6   :  { %v75_v7 = vmul.f32 1.442695, %v73_v5  ;;  %v77_v8 = vmul.f32 1.442695, %v74_v6 }
   0x7   :  { %v101_v27 = vsub.f32 %v66_v0, %v99_v17  ;;  %v102_v28 = vsub.f32 %v67_v1, %v100_v18 }
   0x8   :  { %163 = vpow2.f32 %v75_v7  ;;  %v115_v51 = vld [vmem:[%s248_s2] sm:$0xff] }
   0x9   :  { %165 = vpow2.f32 %v77_v8  ;;  %v124_v54 = vld [vmem:[%s250_s3] sm:$0xff] }
   0xa   :  { %v132_v56 = vld [vmem:[%s251_s4] sm:$0xff] }
  0x15   :  { %v164_v9 = vpop.eup %163 }
  0x16   :  { %v166_v10 = vpop.eup %165  ;;  %v79_v11 = vadd.f32 1.0, %v164_v9  ;;  %v87_v16 = vsel %vm85_vm1, 1.0, %v164_v9 }
  0x17   :  { %v80_v12 = vadd.f32 1.0, %v166_v10  ;;  %v88_v19 = vsel %vm86_vm2, 1.0, %v166_v10 }
  0x18   :  { %167 = vrcp.f32 %v79_v11 }
  0x19   :  { %169 = vrcp.f32 %v80_v12 }
  0x1a   :  { %171 = vlog2.f32 %v79_v11 }
  0x1b   :  { %173 = vlog2.f32 %v80_v12 }
  0x25   :  { %v168_v20 = vpop.eup %167 }
  0x26   :  { %v170_v21 = vpop.eup %169  ;;  %v89_v22 = vmul.f32 %v168_v20, %v87_v16 }
  0x27   :  { %v172_v25 = vpop.eup %171  ;;  %v90_v26 = vmul.f32 %v170_v21, %v88_v19 }
  0x28   :  { %v174_v29 = vpop.eup %173  ;;  %v116_v30 = vmul.f32 %v89_v22, %v69_v14  ;;  %v125_v31 = vadd.f32 %v89_v22, %v69_v14  ;;  %v94_v32 = vmul.f32 0.6931472, %v172_v25  ;;  %v107_v33 = vsub.f32 1.0, %v89_v22 }
  0x29   :  { %v117_v34 = vmul.f32 %v90_v26, %v70_v15  ;;  %v126_v35 = vadd.f32 %v90_v26, %v70_v15  ;;  %v96_v36 = vmul.f32 0.6931472, %v174_v29  ;;  %v108_v37 = vsub.f32 1.0, %v90_v26 }
  0x2a   :  { %v97_v38 = vsub.f32 %v91_v23, %v94_v32  ;;  %v109_v39 = vsel %vm105_vm3, %v107_v33, %v89_v22 }
  0x2b   :  { %v118_v40 = vadd.f32 %v117_v34, %v116_v30  ;;  %v98_v41 = vsub.f32 %v92_v24, %v96_v36  ;;  %v110_v42 = vsel %vm106_vm4, %v108_v37, %v90_v26  ;;  %v111_v44 = vmul.f32 %v109_v39, %v109_v39 }
  0x2c   :  { %v103_v43 = vsub.f32 %v101_v27, %v97_v38  ;;  %v112_v45 = vmul.f32 %v110_v42, %v110_v42  ;;  %v127_v46 = vadd.f32 %v126_v35, %v125_v31 }
  0x2d   :  { %119 = vadd.xlane.f32.xlu0 %v118_v40  ;;  %v104_v47 = vsub.f32 %v102_v28, %v98_v41 }
  0x2e   :  { %v113_v48 = vmul.f32 %v111_v44, %v103_v43 }
  0x2f   :  { %v114_v49 = vmul.f32 %v112_v45, %v104_v47 }
  0x31   :  { %128 = vadd.xlane.f32.xlu0 %v127_v46  ;;  %v133_v50 = vadd.f32 %v114_v49, %v113_v48 }
  0x33   :  { %134 = vadd.xlane.f32.xlu1 %v133_v50 }
  0xb6   :  { %v120_v52 = vpop.xlane.xlu0 %119 }
  0xb7   :  { %v121_v53 = vadd.f32 %v120_v52, %v115_v51 }
  0xb9   :  { %123 = vst.msk [vmem:[%s248_s2] sm:$0xff] %vm62_vm0, %v121_v53 }
  0xba   :  { %v129_v55 = vpop.xlane.xlu0 %128 }
  0xbb   :  { %v130_v57 = vadd.f32 %v129_v55, %v124_v54 }
  0xbc   :  { %v135_v58 = vpop.xlane.xlu1 %134 }
  0xbd   :  { %131 = vst.msk [vmem:[%s250_s3] sm:$0xff] %vm62_vm0, %v130_v57  ;;  %v136_v59 = vadd.f32 %v135_v58, %v132_v56 }
  0xbf   :  { %137 = vst.msk [vmem:[%s251_s4] sm:$0xff] %vm62_vm0, %v136_v59 }

</bundles_post_ra>
